<compile_context>
chip_gen: v7x
topology: tpu7x:2x2x1
jax: 0.10.0
libtpu: 0.0.40
codegen_flags: <defaults>
</compile_context>

<pallas_src>
import jax
import jax.numpy as jnp
from jax.experimental import pallas as pl
from jax.experimental.pallas import tpu as pltpu

EPS = 1e-8

# ~512*1024 spatial elements per block: 3 channels * 4 B * (in + out, double
# buffered) -> ~24 MiB per grid step.  Fits the 48 MiB scoped-VMEM limit set
# below on every generation (v5e/v6e: 128 MiB physical, v7x: 64 MiB per TC).
_MAX_BLOCK_ELEMS = 512 * 1024
_VMEM_LIMIT_BYTES = 48 * 1024 * 1024


def _bgr_to_hsv_kernel(x_ref, o_ref):
    # x_ref block: (1, 3, rows, lanes) with channels in BGR order.
    b = x_ref[0, 0, :, :]
    g = x_ref[0, 1, :, :]
    r = x_ref[0, 2, :, :]

    mx = jnp.maximum(jnp.maximum(r, g), b)
    mn = jnp.minimum(jnp.minimum(r, g), b)
    d = mx - mn  # computed once, reused for hue and saturation

    # One reciprocal (EUP) instead of three long-latency divides.
    inv = pl.reciprocal(d + EPS, approx=False)

    # Same precedence as the sequential masked assignments in PyTorch:
    # B==max first, then G==max overwrites, then R==max, then gray.
    hue = jnp.where(b == mx, 4.0 + (r - g) * inv, 0.0)
    hue = jnp.where(g == mx, 2.0 + (b - r) * inv, hue)
    # When r is the max, (g - b) * inv is in [-1, 1], so `% 6` reduces to a
    # compare + add + select on the VPU.
    t = (g - b) * inv
    t = jnp.where(t < 0.0, t + 6.0, t)
    hue = jnp.where(r == mx, t, hue)
    # No explicit `mn == mx` override needed: when all channels are equal,
    # r == mx holds and t == 0, so hue is already 0 (matches PyTorch).

    sat = d * pl.reciprocal(mx + EPS, approx=False)
    sat = jnp.where(mx == 0.0, 0.0, sat)

    o_ref[0, 0, :, :] = hue * (1.0 / 6.0)
    o_ref[0, 1, :, :] = sat
    o_ref[0, 2, :, :] = mx


def _choose_layout(total):
    """Pick a (rows, lanes) re-view of the flattened spatial dim.

    `total` is a multiple of 128.  Prefer the widest lane width that keeps
    rows a multiple of 8 (full sublanes); fall back to rows >= 8, then 128
    lanes (full-extent block is still legal when rows < 8).
    """
    candidates = (2048, 1024, 512, 256, 128)
    for cand in candidates:
        if total % cand == 0 and (total // cand) % 8 == 0:
            return total // cand, cand
    for cand in candidates:
        if total % cand == 0 and (total // cand) >= 8:
            return total // cand, cand
    for cand in (128, 256, 512):
        if total % cand == 0:
            return total // cand, cand
    raise ValueError("spatial extent must be padded to a multiple of 128")


def bgr_to_hsv(img):
    """img: (B, 3, H, W) float32 in BGR channel order, values in [0, 1)."""
    B, C, H, W = img.shape
    assert C == 3, "BGR_HSV expects 3 channels"
    img = img.astype(jnp.float32)

    total = H * W
    flat = img.reshape(B, 3, total)

    # Pad the flattened spatial extent so the last dim of every block is a
    # multiple of 128 (unmasked full-lane stores on every shape).
    padded_total = total
    if total % 128 != 0:
        padded_total = ((total + 1023) // 1024) * 1024
        flat = jnp.pad(flat, ((0, 0), (0, 0), (0, padded_total - total)))

    rows, lanes = _choose_layout(padded_total)
    x = flat.reshape(B, 3, rows, lanes)

    # Row tile: largest multiple of 8 that keeps the block under the VMEM
    # budget; use the full extent (always legal) if the whole slab fits.
    max_rows = max(8, (_MAX_BLOCK_ELEMS // lanes) // 8 * 8)
    block_rows = rows if rows <= max_rows else max_rows

    # v7x megacore: make sure there are at least 2 grid steps whenever the
    # image is large enough to split, so both TensorCores get work.
    if B * pl.cdiv(rows, block_rows) < 2 and rows >= 16:
        block_rows = max(8, ((rows + 1) // 2 + 7) // 8 * 8)

    grid = (B, pl.cdiv(rows, block_rows))

    block = (1, 3, block_rows, lanes)
    spec = pl.BlockSpec(block, lambda b, i: (b, 0, i, 0))

    out = pl.pallas_call(
        _bgr_to_hsv_kernel,
        out_shape=jax.ShapeDtypeStruct((B, 3, rows, lanes), jnp.float32),
        grid=grid,
        in_specs=[spec],
        out_specs=spec,
        compiler_params=pltpu.CompilerParams(
            dimension_semantics=("parallel", "parallel"),
            vmem_limit_bytes=_VMEM_LIMIT_BYTES),
    )(x)

    out = out.reshape(B, 3, padded_total)
    if padded_total != total:
        out = out[:, :, :total]
    return out.reshape(B, 3, H, W)


def _reference_bgr_to_hsv(img):
    """Pure-JAX reference mirroring the PyTorch forward semantics."""
    rgb = img[:, ::-1]  # [2,1,0] permute: BGR -> RGB
    r, g, b = rgb[:, 0], rgb[:, 1], rgb[:, 2]
    mx = jnp.max(rgb, axis=1)
    mn = jnp.min(rgb, axis=1)
    d = mx - mn + EPS
    hue = jnp.where(b == mx, 4.0 + (r - g) / d, 0.0)
    hue = jnp.where(g == mx, 2.0 + (b - r) / d, hue)
    hue = jnp.where(r == mx, jnp.mod((g - b) / d, 6.0), hue)
    hue = jnp.where(mn == mx, 0.0, hue)
    hue = hue / 6.0
    sat = (mx - mn) / (mx + EPS)
    sat = jnp.where(mx == 0.0, 0.0, sat)
    val = mx
    return jnp.stack([hue, sat, val], axis=1)


if __name__ == "__main__":
    key = jax.random.PRNGKey(0)

    # Primary small test, matching the module's (B, 3, H, W) contract.
    B, C, H, W = 2, 3, 16, 16
    x = jax.random.uniform(key, (B, C, H, W), dtype=jnp.float32,
                           minval=0.0, maxval=1.0)
    hsv = jax.block_until_ready(bgr_to_hsv(x))
    ref = _reference_bgr_to_hsv(x)
    assert hsv.shape == (B, 3, H, W)
    assert jnp.allclose(hsv, ref, atol=2e-6, rtol=2e-6), (
        "max abs err = %e" % float(jnp.max(jnp.abs(hsv - ref))))

    # Odd spatial size exercises the padded (non-multiple-of-128) path and
    # the B == 1 grid handling.
    key2 = jax.random.PRNGKey(1)
    x2 = jax.random.uniform(key2, (1, 3, 13, 19), dtype=jnp.float32,
                            minval=0.0, maxval=1.0)
    hsv2 = jax.block_until_ready(bgr_to_hsv(x2))
    ref2 = _reference_bgr_to_hsv(x2)
    assert hsv2.shape == (1, 3, 13, 19)
    assert jnp.allclose(hsv2, ref2, atol=2e-6, rtol=2e-6), (
        "max abs err = %e" % float(jnp.max(jnp.abs(hsv2 - ref2))))

    print("KERNEL_OK")
</pallas_src>

<mosaic_0001>
module attributes {stable_mosaic.version = 11 : i64} {
  func.func @_bgr_to_hsv_kernel(%arg0: i32, %arg1: i32, %arg2: memref<1x3x2x128xf32, #tpu.memory_space<vmem>>, %arg3: memref<1x3x2x128xf32, #tpu.memory_space<vmem>>) attributes {dimension_semantics = [#tpu.dimension_semantics<parallel>, #tpu.dimension_semantics<parallel>], iteration_bounds = array<i64: 2, 1>, scalar_prefetch = 0 : i64, scratch_operands = 0 : i64, tpu.core_type = #tpu.core_type<tc>, window_params = [{transform_indices = @transform_0, window_bounds = array<i64: 1, 3, 2, 128>}, {transform_indices = @transform_1, window_bounds = array<i64: 1, 3, 2, 128>}]} {
    %c0 = arith.constant 0 : index
    %c0_0 = arith.constant 0 : index
    %c0_1 = arith.constant 0 : index
    %c0_2 = arith.constant 0 : index
    %0 = vector.load %arg2[%c0, %c0_0, %c0_1, %c0_2] : memref<1x3x2x128xf32, #tpu.memory_space<vmem>>, vector<1x1x2x128xf32>
    %1 = vector.shape_cast %0 : vector<1x1x2x128xf32> to vector<2x128xf32>
    %c0_3 = arith.constant 0 : index
    %c1 = arith.constant 1 : index
    %c0_4 = arith.constant 0 : index
    %c0_5 = arith.constant 0 : index
    %2 = vector.load %arg2[%c0_3, %c1, %c0_4, %c0_5] : memref<1x3x2x128xf32, #tpu.memory_space<vmem>>, vector<1x1x2x128xf32>
    %3 = vector.shape_cast %2 : vector<1x1x2x128xf32> to vector<2x128xf32>
    %c0_6 = arith.constant 0 : index
    %c2 = arith.constant 2 : index
    %c0_7 = arith.constant 0 : index
    %c0_8 = arith.constant 0 : index
    %4 = vector.load %arg2[%c0_6, %c2, %c0_7, %c0_8] : memref<1x3x2x128xf32, #tpu.memory_space<vmem>>, vector<1x1x2x128xf32>
    %5 = vector.shape_cast %4 : vector<1x1x2x128xf32> to vector<2x128xf32>
    %6 = arith.maximumf %5, %3 : vector<2x128xf32>
    %7 = arith.maximumf %6, %1 : vector<2x128xf32>
    %8 = arith.minimumf %5, %3 : vector<2x128xf32>
    %9 = arith.minimumf %8, %1 : vector<2x128xf32>
    %10 = arith.subf %7, %9 : vector<2x128xf32>
    %cst = arith.constant 9.99999993E-9 : f32
    %11 = vector.broadcast %cst : f32 to vector<2x128xf32>
    %12 = arith.addf %10, %11 : vector<2x128xf32>
    %13 = tpu.reciprocal %12 : vector<2x128xf32> -> vector<2x128xf32>
    %14 = arith.cmpf oeq, %1, %7 : vector<2x128xf32>
    %15 = arith.subf %5, %3 : vector<2x128xf32>
    %16 = arith.mulf %15, %13 : vector<2x128xf32>
    %cst_9 = arith.constant 4.000000e+00 : f32
    %17 = vector.broadcast %cst_9 : f32 to vector<2x128xf32>
    %18 = arith.addf %17, %16 : vector<2x128xf32>
    %cst_10 = arith.constant 0.000000e+00 : f32
    %19 = vector.broadcast %cst_10 : f32 to vector<2x128xf32>
    %20 = arith.select %14, %18, %19 : vector<2x128xi1>, vector<2x128xf32>
    %21 = arith.cmpf oeq, %3, %7 : vector<2x128xf32>
    %22 = arith.subf %1, %5 : vector<2x128xf32>
    %23 = arith.mulf %22, %13 : vector<2x128xf32>
    %cst_11 = arith.constant 2.000000e+00 : f32
    %24 = vector.broadcast %cst_11 : f32 to vector<2x128xf32>
    %25 = arith.addf %24, %23 : vector<2x128xf32>
    %26 = arith.select %21, %25, %20 : vector<2x128xi1>, vector<2x128xf32>
    %27 = arith.subf %3, %1 : vector<2x128xf32>
    %28 = arith.mulf %27, %13 : vector<2x128xf32>
    %cst_12 = arith.constant 0.000000e+00 : f32
    %29 = vector.broadcast %cst_12 : f32 to vector<2x128xf32>
    %30 = arith.cmpf olt, %28, %29 : vector<2x128xf32>
    %cst_13 = arith.constant 6.000000e+00 : f32
    %31 = vector.broadcast %cst_13 : f32 to vector<2x128xf32>
    %32 = arith.addf %28, %31 : vector<2x128xf32>
    %33 = arith.select %30, %32, %28 : vector<2x128xi1>, vector<2x128xf32>
    %34 = arith.cmpf oeq, %5, %7 : vector<2x128xf32>
    %35 = arith.select %34, %33, %26 : vector<2x128xi1>, vector<2x128xf32>
    %cst_14 = arith.constant 9.99999993E-9 : f32
    %36 = vector.broadcast %cst_14 : f32 to vector<2x128xf32>
    %37 = arith.addf %7, %36 : vector<2x128xf32>
    %38 = tpu.reciprocal %37 : vector<2x128xf32> -> vector<2x128xf32>
    %39 = arith.mulf %10, %38 : vector<2x128xf32>
    %cst_15 = arith.constant 0.000000e+00 : f32
    %40 = vector.broadcast %cst_15 : f32 to vector<2x128xf32>
    %41 = arith.cmpf oeq, %7, %40 : vector<2x128xf32>
    %cst_16 = arith.constant 0.000000e+00 : f32
    %42 = vector.broadcast %cst_16 : f32 to vector<2x128xf32>
    %43 = arith.select %41, %42, %39 : vector<2x128xi1>, vector<2x128xf32>
    %cst_17 = arith.constant 0.166666672 : f32
    %44 = vector.broadcast %cst_17 : f32 to vector<2x128xf32>
    %45 = arith.mulf %35, %44 : vector<2x128xf32>
    %c0_18 = arith.constant 0 : index
    %c0_19 = arith.constant 0 : index
    %c0_20 = arith.constant 0 : index
    %c0_21 = arith.constant 0 : index
    %46 = vector.load %arg3[%c0_18, %c0_19, %c0_20, %c0_21] : memref<1x3x2x128xf32, #tpu.memory_space<vmem>>, vector<1x1x2x128xf32>
    %47 = vector.shape_cast %46 : vector<1x1x2x128xf32> to vector<2x128xf32>
    %48 = vector.shape_cast %45 : vector<2x128xf32> to vector<1x1x2x128xf32>
    tpu.vector_store %arg3[%c0_18, %c0_19, %c0_20, %c0_21], %48 {strides = array<i32>} : memref<1x3x2x128xf32, #tpu.memory_space<vmem>>, vector<1x1x2x128xf32>,
    %c0_22 = arith.constant 0 : index
    %c1_23 = arith.constant 1 : index
    %c0_24 = arith.constant 0 : index
    %c0_25 = arith.constant 0 : index
    %49 = vector.load %arg3[%c0_22, %c1_23, %c0_24, %c0_25] : memref<1x3x2x128xf32, #tpu.memory_space<vmem>>, vector<1x1x2x128xf32>
    %50 = vector.shape_cast %49 : vector<1x1x2x128xf32> to vector<2x128xf32>
    %51 = vector.shape_cast %43 : vector<2x128xf32> to vector<1x1x2x128xf32>
    tpu.vector_store %arg3[%c0_22, %c1_23, %c0_24, %c0_25], %51 {strides = array<i32>} : memref<1x3x2x128xf32, #tpu.memory_space<vmem>>, vector<1x1x2x128xf32>,
    %c0_26 = arith.constant 0 : index
    %c2_27 = arith.constant 2 : index
    %c0_28 = arith.constant 0 : index
    %c0_29 = arith.constant 0 : index
    %52 = vector.load %arg3[%c0_26, %c2_27, %c0_28, %c0_29] : memref<1x3x2x128xf32, #tpu.memory_space<vmem>>, vector<1x1x2x128xf32>
    %53 = vector.shape_cast %52 : vector<1x1x2x128xf32> to vector<2x128xf32>
    %54 = vector.shape_cast %7 : vector<2x128xf32> to vector<1x1x2x128xf32>
    tpu.vector_store %arg3[%c0_26, %c2_27, %c0_28, %c0_29], %54 {strides = array<i32>} : memref<1x3x2x128xf32, #tpu.memory_space<vmem>>, vector<1x1x2x128xf32>,
    return
  }
  func.func @transform_0(%arg0: i32, %arg1: i32) -> (i32, i32, i32, i32) {
    %c0_i32 = arith.constant 0 : i32
    %c0_i32_0 = arith.constant 0 : i32
    %c0_i32_1 = arith.constant 0 : i32
    return %arg0, %c0_i32, %arg1, %c0_i32_0 : i32, i32, i32, i32
  }
  func.func @transform_1(%arg0: i32, %arg1: i32) -> (i32, i32, i32, i32) {
    %c0_i32 = arith.constant 0 : i32
    %c0_i32_0 = arith.constant 0 : i32
    %c0_i32_1 = arith.constant 0 : i32
    return %arg0, %c0_i32, %arg1, %c0_i32_0 : i32, i32, i32, i32
  }
}

</mosaic_0001>

<bundles_post_ra>
// kernel: tpu_custom_call.1
= control target key start
LH: loop header
LB: loop body
LE: loop exit
PB: predicated region body
PF: predicated region fallthrough
CT: control target
= control target key end

     0   :  { %6 = vsyncpa [#allocation3], 0  ;;  %s690_s0 = inlined_call_operand.hbm [shape: f32[2,3,2,128], index: 0, kind: input, shape index: {}]   ;;  %s691_s1 = inlined_call_operand.hbm [shape: f32[2,3,2,128], index: 1, kind: output, shape index: {}]  }
   0x1   :  { %8 = vsyncpa [#allocation3 + $0x1], 0 }
   0x2   :  { %9 = vsyncpa [#allocation4], 0 }
   0x3   :  { %11 = vsyncpa [#allocation4 + $0x1], 0  ;;  %s509_s6 = smov 0   ;;  %s511_s7 = smov 0  }
   0x4   :  { %s513_s8 = smov 0   ;;  %s515_s9 = smov 0  }
   0x5   :  { %s517_s10 = smov 0   ;;  %s519_s11 = smov 0  }
   0x6 LB: > { %s292_s12 = sadd.s32 4294967295, %s491_s11   ;;  %s293_s13 = sadd.s32 4294967294, %s491_s11   ;;  %s491_s11 = sphi %s519_s11, %s17_s11   ;;  %s487_s10 = sphi %s517_s10, %s706_s10   ;;  %s483_s9 = sphi %s515_s9, %s705_s9   ;;  %s479_s8 = sphi %s513_s8, %s704_s8   ;;  %s475_s7 = sphi %s511_s7, %s703_s7   ;;  %s471_s6 = sphi %s509_s6, %s702_s6  }
   0x7   : > { %s29_s14 = sadd.s32 1, %s487_s10  ;;  %s38_s15 = sadd.s32 1, %s479_s8 }
   0x8   : > { %p31_p0 = scmp.ge.s32.totalorder %s29_s14, 2  ;;  %p45_p1 = scmp.ne.s32.totalorder %s479_s8, %s475_s7 }
   0x9   : > { %p46_p2 = scmp.eq.s32.totalorder %s491_s11, 0  ;;  %p51_p3 = scmp.ne.s32.totalorder %s475_s7, %s471_s6 }
   0xa   : > { %s708_s14 = smov (%p31_p0, %s29_s14), 0  ;;  %p52_p5 = scmp.eq.s32.totalorder %s292_s12, 0 }
   0xb   : > { %p550_p4 = por %p46_p2, %p45_p1  ;;  %s33_s17 = ssub.s32 %s487_s10, %s708_s14 }
   0xc   : > { %p77_p6 = scmp.eq.s32.totalorder %s292_s12, 1  ;;  %p36_p7 = scmp.eq.s32.totalorder %s33_s17, 0 }
   0xd   : > { %p556_p8 = por %p52_p5, %p51_p3  ;;  %p83_p10 = scmp.eq.s32.totalorder %s293_s13, 1 }
   0xe   : > { %p560_p9 = por %p77_p6, %p45_p1  ;;  %p321_p13 = scmp.lt.s32.totalorder %s491_s11, 2 }
   0xf   : > { %s565_s20 = scalar_select %p36_p7, %s479_s8, %s38_s15  }
  0x10   : > { %s695_s19 = scalar_select %p560_p9, 1, 0 }
  0x11   : > { %p567_p11 = por %p83_p10, %p51_p3  ;;  %s103_s22 = sand.u32 1, %s479_s8  }
  0x12   : > { %s305_s23 = smul.u32 6, %s103_s22  ;;  %p577_p0 = pnand %p321_p13, %p550_p4 }
  0x13   : > { %s696_s21 = scalar_select %p567_p11, 1, 0 }
  0x14   : > { %s306_s24 = smul.u32 96, %s487_s10  ;;  %s107_s29 = scalar_lea.vmem [#allocation2], %s305_s23 }
  0x15   : > { %s115_s30 = sshll.u32 %s107_s29, 4  ;;  %s589_s2 = scalar_lea.sflag [#allocation3], %s103_s22  ;;  %s586_s30 = int_to_ptr.vmem [resolvable:$true] %s115_s30 }
  0x16   : > { %s584_s28 = scalar_lea.hbm %s690_s0, %s306_s24  ;;  %p381_p3 = pneg %p577_p0 }
  0x17   : > { %s379_s3 = scalar_lea.hbm %s584_s28, 96  ;;  %s384_s12 = scalar_lea.hbm %s690_s0, 192 }
  0x18   : > { %p380_p2 = scmp.ne.s32.totalorder %s584_s28, %s379_s3  ;;  %p385_p6 = scmp.lt.u32.totalorder %s584_s28, %s690_s0 }
  0x19   : > { %p386_p7 = scmp.lt.u32.totalorder %s384_s12, %s379_s3  ;;  %p388_p13 = scmp.lt.u32.totalorder %s379_s3, %s584_s28 }
  0x1a   : > { %p382_p4 = pnand %p381_p3, %p380_p2 }
  0x1b   : > { %p387_p10 = por %p386_p7, %p385_p6 }
  0x1c   : > { %p383_p5 = pneg %p382_p4 }
  0x1d   : > { %p389_p12 = por %p388_p13, %p387_p10 }
  0x1f   : > { %p390_p1 = pnand %p389_p12, %p383_p5 }
  0x21   : > { %393 = shalt.err (!%p390_p1)
}
  0x22   : > { %s394_s16 = scalar_lea.vmem %s586_s30, 96  ;;  %s493_s17 = smov [#allocation2]  }
  0x23   : > { %p395_p2 = scmp.ne.s32.totalorder %s586_s30, %s394_s16  ;;  %s399_s22 = sshll.u32 %s493_s17, 4  ;;  %s400_s22 = int_to_ptr.vmem [resolvable:$false] %s399_s22 }
  0x24   : > { %s401_s23 = scalar_lea.vmem %s400_s22, 192  ;;  %p402_p9 = scmp.lt.s32.totalorder %s586_s30, %s400_s22 }
  0x25   : > { %p397_p4 = pnand %p395_p2, %p381_p3  ;;  %p403_p6 = scmp.lt.s32.totalorder %s401_s23, %s394_s16 }
  0x27   : > { %p398_p11 = pneg %p397_p4  ;;  %p404_p7 = por %p403_p6, %p402_p9 }
  0x29   : > { %p405_p10 = pnand %p404_p7, %p398_p11 }
  0x2b   : > { %408 = shalt.err (!%p405_p10)
}
  0x2c   : > { %s494_s24 = smov 32   ;;  %s495_s26 = smov 2  }
  0x2d   : > { %316 = dma.hbm_to_vmem [thread:$0]  (!%p577_p0), %s584_s28, 96, %s586_s30, %s589_s2, %s494_s24, %s494_s24, %s495_s26  }
  0x2e   : > { %p123_p12 = scmp.lt.s32.totalorder %s491_s11, 3  ;;  %p698_p1 = scmp.ge.s32.totalorder %s491_s11, 1 }
  0x30   : > { %p124_p3 = pnand %p698_p1, %p123_p12 }
  0x31   : > { %s621_s27 = sand.u32 (!%p124_p3), 1, %s475_s7  }
  0x32   : > { %127 = sbr.rel (%p124_p3) target bundleno = 103 (0x67), region = 24  ;;  %s130_s3 = scalar_lea.sflag (!%p124_p3), [#allocation3], %s621_s27 }
  0x33   : > { %s307_s29 = smul.u32 (!%p124_p3), 6, %s621_s27 }
  0x35   : > { %s133_s4 = scalar_lea.vmem (!%p124_p3), [#allocation2], %s307_s29 }
  0x39   : > { %462 = dma.done.wait (%p556_p8), %s130_s3, 96  }
  0x3a   : > { %464 = vsyncadd (%p556_p8), %s130_s3, 4294967200  ;;  %v152_v0 = vld [vmem:[%s133_s4] sm:$0x3]  ;;  %v298_v1 = vld [vmem:[%s133_s4 + $0x2] sm:$0x3]  ;;  %s629_s25 = scalar_lea.vmem [#allocation5], %s307_s29 }
  0x3b   : > { %v299_v2 = vld [vmem:[%s133_s4 + $0x4] sm:$0x3]  ;;  %v174_v12 = vsub.f32 %v298_v1, %v152_v0  ;;  %s207_s18 = sshll.u32 %s629_s25, 4  ;;  %s308_s28 = smul.u32 96, %s483_s9  ;;  %s635_s18 = int_to_ptr.vmem [resolvable:$true] %s207_s18 }
  0x3c   : > { %v157_v3 = vmax.f32 %v299_v2, %v298_v1  ;;  %v159_v4 = vmin.f32 %v299_v2, %v298_v1  ;;  %v165_v10 = vsub.f32 %v299_v2, %v298_v1  ;;  %v170_v11 = vsub.f32 %v152_v0, %v299_v2  ;;  %s193_s12 = scalar_lea.sflag [#allocation4], %s621_s27  ;;  %s409_s13 = scalar_lea.vmem %s635_s18, 96 }
  0x3d   : > { %s640_s5 = scalar_lea.hbm %s691_s1, %s308_s28  ;;  %p410_p8 = scmp.ne.s32.totalorder %s635_s18, %s409_s13 }
  0x3e   : > { %v158_v5 = vmax.f32 %v157_v3, %v152_v0  ;;  %v160_v6 = vmin.f32 %v159_v4, %v152_v0  ;;  %p699_p9 = scmp.ne.s32.totalorder %s695_s19, 0  ;;  %s496_s9 = smov [#allocation5]  }
  0x3f   : > { %s413_s15 = sshll.u32 %s496_s9, 4  ;;  %s414_s15 = int_to_ptr.vmem [resolvable:$false] %s413_s15 }
  0x40   : > { %v161_v7 = vsub.f32 %v158_v5, %v160_v6  ;;  %301 = vst [vmem:[%s629_s25 + $0x4] sm:$0x3] %v158_v5  ;;  %v181_v8 = vadd.f32 1e-08, %v158_v5  ;;  %vm184_vm0 = vcmp.eq.f32.partialorder %v158_v5, 0.0  ;;  %vm164_vm1 = vcmp.eq.f32.partialorder %v152_v0, %v158_v5  ;;  %p411_p11 = pnand %p410_p8, %p699_p9  ;;  %s415_s16 = scalar_lea.vmem %s414_s15, 192 }
  0x41   : > { %vm169_vm2 = vcmp.eq.f32.partialorder %v298_v1, %v158_v5  ;;  %vm179_vm4 = vcmp.eq.f32.partialorder %v299_v2, %v158_v5  ;;  %p416_p5 = scmp.lt.s32.totalorder %s635_s18, %s414_s15  ;;  %p417_p13 = scmp.lt.s32.totalorder %s415_s16, %s409_s13 }
  0x42   : > { %v162_v9 = vadd.f32 1e-08, %v161_v7  ;;  %375 = vrcp.f32 %v181_v8  ;;  %p412_p0 = pneg %p411_p11 }
  0x43   : > { %p418_p2 = por %p417_p13, %p416_p5 }
  0x44   : > { %377 = vrcp.f32 %v162_v9 }
  0x45   : > { %p419_p4 = pnand %p418_p2, %p412_p0 }
  0x4c   : > { %v376_v13 = vpop.eup %375 }
  0x4d   : > { %v183_v15 = vmul.f32 %v376_v13, %v161_v7 }
  0x4e   : > { %v378_v14 = vpop.eup %377 }
  0x4f   : > { %v166_v16 = vmul.f32 %v378_v14, %v165_v10  ;;  %v171_v17 = vmul.f32 %v378_v14, %v170_v11  ;;  %v175_v18 = vmul.f32 %v378_v14, %v174_v12  ;;  %v185_v19 = vsel %vm184_vm0, 0.0, %v183_v15 }
  0x50   : > { %300 = vst [vmem:[%s629_s25 + $0x2] sm:$0x3] %v185_v19 }
  0x51   : > { %v167_v20 = vadd.f32 4.0, %v166_v16  ;;  %v172_v21 = vadd.f32 2.0, %v171_v17  ;;  %vm176_vm3 = vcmp.lt.f32.partialorder %v175_v18, 0.0  ;;  %v177_v22 = vadd.f32 6.0, %v175_v18 }
  0x53   : > { %v168_v23 = vsel %vm164_vm1, %v167_v20, 0.0  ;;  %v178_v24 = vsel %vm176_vm3, %v177_v22, %v175_v18 }
  0x54   : > { %v173_v25 = vsel %vm169_vm2, %v172_v21, %v168_v23 }
  0x55   : > { %v180_v26 = vsel %vm179_vm4, %v178_v24, %v173_v25 }
  0x56   : > { %v186_v27 = vmul.f32 0.16666667, %v180_v26 }
  0x58   : > { %187 = vst [vmem:[%s629_s25] sm:$0x3] %v186_v27 }
  0x59   : > { %422 = shalt.err (!%p419_p4)
}
  0x5a   : > { %s423_s17 = scalar_lea.hbm %s640_s5, 96  ;;  %s427_s24 = scalar_lea.hbm %s691_s1, 192 }
  0x5b   : > { %p424_p6 = scmp.ne.s32.totalorder %s640_s5, %s423_s17  ;;  %p428_p12 = scmp.lt.u32.totalorder %s640_s5, %s691_s1 }
  0x5c   : > { %p429_p1 = scmp.lt.u32.totalorder %s427_s24, %s423_s17  ;;  %p431_p8 = scmp.lt.u32.totalorder %s423_s17, %s640_s5 }
  0x5d   : > { %p425_p7 = pnand %p424_p6, %p699_p9 }
  0x5e   : > { %p430_p3 = por %p429_p1, %p428_p12 }
  0x5f   : > { %p426_p10 = pneg %p425_p7 }
  0x60   : > { %p432_p11 = por %p431_p8, %p430_p3 }
  0x62   : > { %p433_p0 = pnand %p432_p11, %p426_p10 }
  0x64   : > { %436 = shalt.err (!%p433_p0)
}
  0x65   : > { %s497_s3 = smov 32   ;;  %s498_s4 = smov 2  }
  0x66   : > { %311 = dma.vmem_to_hbm [thread:$0]  (%p699_p9), %s635_s18, 96, %s640_s5, %s193_s12, %s497_s3, %s497_s3, %s498_s4  }
  0x67 PF: > { %s222_s25 = sand.u32 1, %s471_s6   ;;  %p700_p5 = scmp.ne.s32.totalorder %s696_s21, 0 }
  0x68   : > { %p701_p13 = scmp.ge.s32.totalorder %s491_s11, 2  ;;  %s223_s28 = scalar_lea.sflag [#allocation4], %s222_s25 }
  0x6a   : > { %p318_p2 = pnand %p701_p13, %p700_p5 }
  0x6c   : > { %466 = dma.done.wait (!%p318_p2), %s223_s28, 96  }
  0x6d   : > { %468 = vsyncadd (!%p318_p2), %s223_s28, 4294967200  ;;  %s17_s11 = sadd.s32 1, %s491_s11   ;;  %s702_s6 = smov %s475_s7 }
  0x6e   : > { %p14_p4 = scmp.ge.s32.totalorder %s17_s11, 4   ;;  %s703_s7 = smov %s479_s8 }
  0x6f   : > { %s704_s8 = smov %s565_s20  ;;  %s705_s9 = smov %s487_s10 }
  0x70   : > { %s706_s10 = smov %s708_s14  ;;  %16 = sbr.rel (!%p14_p4) target bundleno = 6 (0x6), region = 73 }
  0x77   :  { %228 = vsyncpa [#allocation3], 1 }
  0x78   :  { %230 = vsyncpa [#allocation3 + $0x1], 1 }
  0x79   :  { %231 = vsyncpa [#allocation4], 1 }
  0x7a   :  { %233 = vsyncpa [#allocation4 + $0x1], 1 }

</bundles_post_ra>
